<compile_context>
chip_gen: v5e
topology: v5e:2x2
jax: 0.10.0
libtpu: 0.0.40
codegen_flags: <defaults>
</compile_context>

<pallas_src>
import jax
import jax.numpy as jnp
import numpy as np
from jax.experimental import pallas as pl
from jax.experimental.pallas import tpu as pltpu


# ---------------------------------------------------------------------------
# Fused MLP (2 hidden layers, ReLU) + LayerNorm kernel, applied to a row tile.
# Matmuls run in bf16 on the MXU with f32 accumulation; elementwise math f32.
# ---------------------------------------------------------------------------
def mlp_ln_kernel(x_ref, w1_ref, b1_ref, w2_ref, b2_ref, w3_ref, b3_ref,
                  gam_ref, bet_ref, o_ref):
  h = jnp.dot(x_ref[...], w1_ref[...],
              preferred_element_type=jnp.float32) + b1_ref[...]
  h = jnp.maximum(h, 0.0)
  h = jnp.dot(h.astype(jnp.bfloat16), w2_ref[...],
              preferred_element_type=jnp.float32) + b2_ref[...]
  h = jnp.maximum(h, 0.0)
  y = jnp.dot(h.astype(jnp.bfloat16), w3_ref[...],
              preferred_element_type=jnp.float32) + b3_ref[...]
  mu = jnp.mean(y, axis=-1, keepdims=True)
  var = jnp.mean((y - mu) ** 2, axis=-1, keepdims=True)
  o_ref[...] = (y - mu) * jax.lax.rsqrt(var + 1e-5) * gam_ref[...] + bet_ref[...]


def _round_up(x, m):
  return ((x + m - 1) // m) * m


def _pick_tile(rows, requested):
  # Keep >= 2 grid steps when possible (v7x has 2 TensorCores per chip),
  # and keep the sublane dim a multiple of 8.
  half = _round_up(max(1, -(-rows // 2)), 8)
  return max(8, min(requested, half))


def _const_spec(shape):
  nd = len(shape)
  return pl.BlockSpec(shape, lambda i: (0,) * nd)


def _vmem_estimate_bytes(tile, in_dim, units, out_dim):
  x_bytes = tile * in_dim * 2           # bf16 input tile
  out_bytes = tile * out_dim * 4        # f32 output tile
  act_bytes = 2 * tile * units * 4      # live f32 activations inside the body
  w_bytes = (in_dim * units + units * units + units * out_dim) * 2  # bf16
  vec_bytes = (2 * units + 3 * out_dim) * 4
  # inputs/outputs are double-buffered by the Pallas pipeline
  return 2 * (x_bytes + out_bytes) + act_bytes + w_bytes + vec_bytes


def _mlp_ln_block(x, params, requested_tile):
  """LayerNorm(MLP(x)) for x:[rows, in_dim] via a row-tiled Pallas kernel."""
  rows, in_dim = x.shape
  units = params['w1'].shape[1]
  out_dim = params['w3'].shape[1]

  tile = _pick_tile(rows, requested_tile)
  rows_pad = _round_up(rows, tile)
  if rows_pad != rows:
    x = jnp.pad(x, ((0, rows_pad - rows), (0, 0)))

  # bf16 matmul operands (halves weight/activation DMA bytes, fewer MXU passes);
  # biases / gamma / beta stay f32 and all accumulation is f32.
  x = x.astype(jnp.bfloat16)
  w1 = params['w1'].astype(jnp.bfloat16)
  w2 = params['w2'].astype(jnp.bfloat16)
  w3 = params['w3'].astype(jnp.bfloat16)

  est = _vmem_estimate_bytes(tile, in_dim, units, out_dim)
  vmem_limit = int(min(max(4 * est, 32 * 2 ** 20), 48 * 2 ** 20))

  out = pl.pallas_call(
      mlp_ln_kernel,
      out_shape=jax.ShapeDtypeStruct((rows_pad, out_dim), jnp.float32),
      grid=(rows_pad // tile,),
      in_specs=[
          pl.BlockSpec((tile, in_dim), lambda i: (i, 0)),   # x row tile
          _const_spec((in_dim, units)), _const_spec((1, units)),
          _const_spec((units, units)), _const_spec((1, units)),
          _const_spec((units, out_dim)), _const_spec((1, out_dim)),
          _const_spec((1, out_dim)), _const_spec((1, out_dim)),
      ],
      out_specs=pl.BlockSpec((tile, out_dim), lambda i: (i, 0)),
      compiler_params=pltpu.CompilerParams(
          dimension_semantics=("parallel",),
          vmem_limit_bytes=vmem_limit),
  )(x, w1, params['b1'], w2, params['b2'], w3, params['b3'],
    params['gamma'], params['beta'])
  return out[:rows]


# ---------------------------------------------------------------------------
# InteractionLayer forward (EdgeBlock -> NodeBlock)
# ---------------------------------------------------------------------------
def interaction_layer(nodes, edges, senders, receivers, edge_params, node_params,
                      *, tile_e=512, tile_n=256):
  # EdgeBlock: gather + concat fused by XLA into one (E, De+2*Dn) slab, then a
  # single fused-first-layer MLP + LayerNorm Pallas kernel over edge tiles.
  collected_edges = jnp.concatenate(
      [edges, nodes[receivers], nodes[senders]], axis=1)
  new_edges = _mlp_ln_block(collected_edges, edge_params, tile_e)

  # NodeBlock: true segment reduction (O(E*Oe)) done by XLA, then concat +
  # fused MLP + LayerNorm Pallas kernel over node tiles.
  agg = jax.ops.segment_sum(new_edges, receivers, num_segments=nodes.shape[0])
  collected_nodes = jnp.concatenate([nodes, agg], axis=1)
  new_nodes = _mlp_ln_block(collected_nodes, node_params, tile_n)
  return new_nodes, new_edges


# ---------------------------------------------------------------------------
# Deterministic synthetic parameter init (build_mlp: layers=2, layer_norm=True)
# ---------------------------------------------------------------------------
def init_mlp_params(key, in_dim, units, out_dim):
  ks = jax.random.split(key, 6)

  def lin(k, fi, fo):
    bound = 1.0 / np.sqrt(fi)
    return jax.random.uniform(k, (fi, fo), jnp.float32, -bound, bound)

  return {
      'w1': lin(ks[0], in_dim, units),
      'b1': jax.random.uniform(ks[1], (1, units), jnp.float32, -0.1, 0.1),
      'w2': lin(ks[2], units, units),
      'b2': jax.random.uniform(ks[3], (1, units), jnp.float32, -0.1, 0.1),
      'w3': lin(ks[4], units, out_dim),
      'b3': jax.random.uniform(ks[5], (1, out_dim), jnp.float32, -0.1, 0.1),
      'gamma': jnp.ones((1, out_dim), jnp.float32),
      'beta': jnp.zeros((1, out_dim), jnp.float32),
  }


# ---------------------------------------------------------------------------
# Pure-JAX reference (mirrors the PyTorch module semantics).
# matmul_dtype=None -> full f32 reference; jnp.bfloat16 -> same matmul
# quantization as the kernel (bf16 operands, f32 accumulation).
# ---------------------------------------------------------------------------
def ref_interaction_layer(nodes, edges, senders, receivers, ep, np_,
                          matmul_dtype=None):
  def dot(a, b):
    if matmul_dtype is not None:
      return jnp.dot(a.astype(matmul_dtype), b.astype(matmul_dtype),
                     preferred_element_type=jnp.float32)
    return a @ b

  def mlp(x, p):
    h = jnp.maximum(dot(x, p['w1']) + p['b1'], 0.0)
    h = jnp.maximum(dot(h, p['w2']) + p['b2'], 0.0)
    y = dot(h, p['w3']) + p['b3']
    mu = y.mean(-1, keepdims=True)
    var = ((y - mu) ** 2).mean(-1, keepdims=True)
    return (y - mu) / jnp.sqrt(var + 1e-5) * p['gamma'] + p['beta']

  collected_edges = jnp.concatenate(
      [edges, nodes[receivers], nodes[senders]], axis=1)
  new_edges = mlp(collected_edges, ep)
  agg = jax.ops.segment_sum(new_edges, receivers, num_segments=nodes.shape[0])
  collected_nodes = jnp.concatenate([nodes, agg], axis=1)
  new_nodes = mlp(collected_nodes, np_)
  return new_nodes, new_edges


if __name__ == "__main__":
  # small graph: N nodes with Dn features, E directed edges with De features
  N, E = 64, 256
  Dn, De = 32, 32
  UNITS, EDGE_OUT, NODE_OUT = 64, 32, 32

  key = jax.random.PRNGKey(0)
  kn, ke, ks, kr, kep, knp = jax.random.split(key, 6)
  nodes = jax.random.normal(kn, (N, Dn), jnp.float32)
  edges = jax.random.normal(ke, (E, De), jnp.float32)
  senders = jax.random.randint(ks, (E,), 0, N, jnp.int32)
  receivers = jax.random.randint(kr, (E,), 0, N, jnp.int32)

  edge_params = init_mlp_params(kep, De + 2 * Dn, UNITS, EDGE_OUT)
  node_params = init_mlp_params(knp, Dn + EDGE_OUT, UNITS, NODE_OUT)

  new_nodes, new_edges = interaction_layer(
      nodes, edges, senders, receivers, edge_params, node_params)
  jax.block_until_ready((new_nodes, new_edges))

  # 1) Tight check: reference with the SAME bf16-operand matmuls (validates the
  #    kernel math / tiling / fusion exactly).
  bnodes, bedges = ref_interaction_layer(
      nodes, edges, senders, receivers, edge_params, node_params,
      matmul_dtype=jnp.bfloat16)
  np.testing.assert_allclose(np.asarray(new_edges), np.asarray(bedges),
                             rtol=1e-2, atol=1e-2)
  np.testing.assert_allclose(np.asarray(new_nodes), np.asarray(bnodes),
                             rtol=1e-2, atol=1e-2)

  # 2) Loose aggregate check vs. the full-f32 reference: the only difference is
  #    bf16 matmul-operand quantization (f32 accumulation), so the relative
  #    Frobenius error should stay at the ~1% level.
  fnodes, fedges = ref_interaction_layer(
      nodes, edges, senders, receivers, edge_params, node_params)

  def rel_err(a, b):
    a = np.asarray(a, np.float64)
    b = np.asarray(b, np.float64)
    return np.linalg.norm(a - b) / max(np.linalg.norm(b), 1e-12)

  assert rel_err(new_edges, fedges) < 5e-2
  assert rel_err(new_nodes, fnodes) < 5e-2

  print("KERNEL_OK")
</pallas_src>

<mosaic_0001>
module attributes {stable_mosaic.version = 11 : i64} {
  func.func @mlp_ln_kernel(%arg0: i32, %arg1: memref<128x96xbf16, #tpu.memory_space<vmem>>, %arg2: memref<96x64xbf16, #tpu.memory_space<vmem>>, %arg3: memref<1x64xf32, #tpu.memory_space<vmem>>, %arg4: memref<64x64xbf16, #tpu.memory_space<vmem>>, %arg5: memref<1x64xf32, #tpu.memory_space<vmem>>, %arg6: memref<64x32xbf16, #tpu.memory_space<vmem>>, %arg7: memref<1x32xf32, #tpu.memory_space<vmem>>, %arg8: memref<1x32xf32, #tpu.memory_space<vmem>>, %arg9: memref<1x32xf32, #tpu.memory_space<vmem>>, %arg10: memref<128x32xf32, #tpu.memory_space<vmem>>) attributes {dimension_semantics = [#tpu.dimension_semantics<parallel>], iteration_bounds = array<i64: 2>, scalar_prefetch = 0 : i64, scratch_operands = 0 : i64, tpu.core_type = #tpu.core_type<tc>, window_params = [{transform_indices = @transform_0, window_bounds = array<i64: 128, 96>}, {pipeline_mode = #tpu.pipeline_mode<synchronous>, transform_indices = @transform_1, window_bounds = array<i64: 96, 64>}, {pipeline_mode = #tpu.pipeline_mode<synchronous>, transform_indices = @transform_2, window_bounds = array<i64: 1, 64>}, {pipeline_mode = #tpu.pipeline_mode<synchronous>, transform_indices = @transform_3, window_bounds = array<i64: 64, 64>}, {pipeline_mode = #tpu.pipeline_mode<synchronous>, transform_indices = @transform_4, window_bounds = array<i64: 1, 64>}, {pipeline_mode = #tpu.pipeline_mode<synchronous>, transform_indices = @transform_5, window_bounds = array<i64: 64, 32>}, {pipeline_mode = #tpu.pipeline_mode<synchronous>, transform_indices = @transform_6, window_bounds = array<i64: 1, 32>}, {pipeline_mode = #tpu.pipeline_mode<synchronous>, transform_indices = @transform_7, window_bounds = array<i64: 1, 32>}, {pipeline_mode = #tpu.pipeline_mode<synchronous>, transform_indices = @transform_8, window_bounds = array<i64: 1, 32>}, {transform_indices = @transform_9, window_bounds = array<i64: 128, 32>}]} {
    %c0 = arith.constant 0 : index
    %c0_0 = arith.constant 0 : index
    %0 = vector.load %arg1[%c0, %c0_0] : memref<128x96xbf16, #tpu.memory_space<vmem>>, vector<128x96xbf16>
    %c0_1 = arith.constant 0 : index
    %c0_2 = arith.constant 0 : index
    %1 = vector.load %arg2[%c0_1, %c0_2] : memref<96x64xbf16, #tpu.memory_space<vmem>>, vector<96x64xbf16>
    %cst = arith.constant dense<0.000000e+00> : vector<128x64xf32>
    %2 = tpu.matmul %0, %1, %cst {dimension_numbers = #tpu.dot_dimension_numbers<[1], [0], [0], [1], [0, 0, 1, 1], [], []>} : vector<128x96xbf16>, vector<96x64xbf16>, vector<128x64xf32> -> vector<128x64xf32>
    %c0_3 = arith.constant 0 : index
    %c0_4 = arith.constant 0 : index
    %3 = vector.load %arg3[%c0_3, %c0_4] : memref<1x64xf32, #tpu.memory_space<vmem>>, vector<1x64xf32>
    %4 = vector.broadcast %3 : vector<1x64xf32> to vector<128x64xf32>
    %5 = arith.addf %2, %4 : vector<128x64xf32>
    %cst_5 = arith.constant 0.000000e+00 : f32
    %6 = vector.broadcast %cst_5 : f32 to vector<128x64xf32>
    %7 = arith.maximumf %5, %6 : vector<128x64xf32>
    %8 = arith.truncf %7 : vector<128x64xf32> to vector<128x64xbf16>
    %c0_6 = arith.constant 0 : index
    %c0_7 = arith.constant 0 : index
    %9 = vector.load %arg4[%c0_6, %c0_7] : memref<64x64xbf16, #tpu.memory_space<vmem>>, vector<64x64xbf16>
    %cst_8 = arith.constant dense<0.000000e+00> : vector<128x64xf32>
    %10 = tpu.matmul %8, %9, %cst_8 {dimension_numbers = #tpu.dot_dimension_numbers<[1], [0], [0], [1], [0, 0, 1, 1], [], []>} : vector<128x64xbf16>, vector<64x64xbf16>, vector<128x64xf32> -> vector<128x64xf32>
    %c0_9 = arith.constant 0 : index
    %c0_10 = arith.constant 0 : index
    %11 = vector.load %arg5[%c0_9, %c0_10] : memref<1x64xf32, #tpu.memory_space<vmem>>, vector<1x64xf32>
    %12 = vector.broadcast %11 : vector<1x64xf32> to vector<128x64xf32>
    %13 = arith.addf %10, %12 : vector<128x64xf32>
    %cst_11 = arith.constant 0.000000e+00 : f32
    %14 = vector.broadcast %cst_11 : f32 to vector<128x64xf32>
    %15 = arith.maximumf %13, %14 : vector<128x64xf32>
    %16 = arith.truncf %15 : vector<128x64xf32> to vector<128x64xbf16>
    %c0_12 = arith.constant 0 : index
    %c0_13 = arith.constant 0 : index
    %17 = vector.load %arg6[%c0_12, %c0_13] : memref<64x32xbf16, #tpu.memory_space<vmem>>, vector<64x32xbf16>
    %cst_14 = arith.constant dense<0.000000e+00> : vector<128x32xf32>
    %18 = tpu.matmul %16, %17, %cst_14 {dimension_numbers = #tpu.dot_dimension_numbers<[1], [0], [0], [1], [0, 0, 1, 1], [], []>} : vector<128x64xbf16>, vector<64x32xbf16>, vector<128x32xf32> -> vector<128x32xf32>
    %c0_15 = arith.constant 0 : index
    %c0_16 = arith.constant 0 : index
    %19 = vector.load %arg7[%c0_15, %c0_16] : memref<1x32xf32, #tpu.memory_space<vmem>>, vector<1x32xf32>
    %20 = vector.broadcast %19 : vector<1x32xf32> to vector<128x32xf32>
    %21 = arith.addf %18, %20 : vector<128x32xf32>
    %cst_17 = arith.constant dense<0.000000e+00> : vector<128xf32>
    %22 = vector.multi_reduction <add>, %21, %cst_17 [1] : vector<128x32xf32> to vector<128xf32>
    %23 = vector.shape_cast %22 : vector<128xf32> to vector<128x1xf32>
    %cst_18 = arith.constant 3.200000e+01 : f32
    %24 = vector.broadcast %cst_18 : f32 to vector<128x1xf32>
    %25 = arith.divf %23, %24 : vector<128x1xf32>
    %26 = vector.broadcast %25 : vector<128x1xf32> to vector<128x32xf32>
    %27 = arith.subf %21, %26 : vector<128x32xf32>
    %28 = arith.mulf %27, %27 : vector<128x32xf32>
    %cst_19 = arith.constant dense<0.000000e+00> : vector<128xf32>
    %29 = vector.multi_reduction <add>, %28, %cst_19 [1] : vector<128x32xf32> to vector<128xf32>
    %30 = vector.shape_cast %29 : vector<128xf32> to vector<128x1xf32>
    %cst_20 = arith.constant 3.200000e+01 : f32
    %31 = vector.broadcast %cst_20 : f32 to vector<128x1xf32>
    %32 = arith.divf %30, %31 : vector<128x1xf32>
    %33 = vector.broadcast %25 : vector<128x1xf32> to vector<128x32xf32>
    %34 = arith.subf %21, %33 : vector<128x32xf32>
    %cst_21 = arith.constant 9.99999974E-6 : f32
    %35 = vector.broadcast %cst_21 : f32 to vector<128x1xf32>
    %36 = arith.addf %32, %35 : vector<128x1xf32>
    %37 = math.rsqrt %36 : vector<128x1xf32>
    %38 = vector.broadcast %37 : vector<128x1xf32> to vector<128x32xf32>
    %39 = arith.mulf %34, %38 : vector<128x32xf32>
    %c0_22 = arith.constant 0 : index
    %c0_23 = arith.constant 0 : index
    %40 = vector.load %arg8[%c0_22, %c0_23] : memref<1x32xf32, #tpu.memory_space<vmem>>, vector<1x32xf32>
    %41 = vector.broadcast %40 : vector<1x32xf32> to vector<128x32xf32>
    %42 = arith.mulf %39, %41 : vector<128x32xf32>
    %c0_24 = arith.constant 0 : index
    %c0_25 = arith.constant 0 : index
    %43 = vector.load %arg9[%c0_24, %c0_25] : memref<1x32xf32, #tpu.memory_space<vmem>>, vector<1x32xf32>
    %44 = vector.broadcast %43 : vector<1x32xf32> to vector<128x32xf32>
    %45 = arith.addf %42, %44 : vector<128x32xf32>
    %c0_26 = arith.constant 0 : index
    %c0_27 = arith.constant 0 : index
    %46 = vector.load %arg10[%c0_26, %c0_27] : memref<128x32xf32, #tpu.memory_space<vmem>>, vector<128x32xf32>
    tpu.vector_store %arg10[%c0_26, %c0_27], %45 {strides = array<i32>} : memref<128x32xf32, #tpu.memory_space<vmem>>, vector<128x32xf32>,
    return
  }
  func.func @transform_0(%arg0: i32) -> (i32, i32) {
    %c0_i32 = arith.constant 0 : i32
    %c0_i32_0 = arith.constant 0 : i32
    return %arg0, %c0_i32 : i32, i32
  }
  func.func @transform_1(%arg0: i32) -> (i32, i32) {
    %c0_i32 = arith.constant 0 : i32
    %c0_i32_0 = arith.constant 0 : i32
    %c0_i32_1 = arith.constant 0 : i32
    return %c0_i32, %c0_i32_0 : i32, i32
  }
  func.func @transform_2(%arg0: i32) -> (i32, i32) {
    %c0_i32 = arith.constant 0 : i32
    %c0_i32_0 = arith.constant 0 : i32
    %c0_i32_1 = arith.constant 0 : i32
    return %c0_i32, %c0_i32_0 : i32, i32
  }
  func.func @transform_3(%arg0: i32) -> (i32, i32) {
    %c0_i32 = arith.constant 0 : i32
    %c0_i32_0 = arith.constant 0 : i32
    %c0_i32_1 = arith.constant 0 : i32
    return %c0_i32, %c0_i32_0 : i32, i32
  }
  func.func @transform_4(%arg0: i32) -> (i32, i32) {
    %c0_i32 = arith.constant 0 : i32
    %c0_i32_0 = arith.constant 0 : i32
    %c0_i32_1 = arith.constant 0 : i32
    return %c0_i32, %c0_i32_0 : i32, i32
  }
  func.func @transform_5(%arg0: i32) -> (i32, i32) {
    %c0_i32 = arith.constant 0 : i32
    %c0_i32_0 = arith.constant 0 : i32
    %c0_i32_1 = arith.constant 0 : i32
    return %c0_i32, %c0_i32_0 : i32, i32
  }
  func.func @transform_6(%arg0: i32) -> (i32, i32) {
    %c0_i32 = arith.constant 0 : i32
    %c0_i32_0 = arith.constant 0 : i32
    %c0_i32_1 = arith.constant 0 : i32
    return %c0_i32, %c0_i32_0 : i32, i32
  }
  func.func @transform_7(%arg0: i32) -> (i32, i32) {
    %c0_i32 = arith.constant 0 : i32
    %c0_i32_0 = arith.constant 0 : i32
    %c0_i32_1 = arith.constant 0 : i32
    return %c0_i32, %c0_i32_0 : i32, i32
  }
  func.func @transform_8(%arg0: i32) -> (i32, i32) {
    %c0_i32 = arith.constant 0 : i32
    %c0_i32_0 = arith.constant 0 : i32
    %c0_i32_1 = arith.constant 0 : i32
    return %c0_i32, %c0_i32_0 : i32, i32
  }
  func.func @transform_9(%arg0: i32) -> (i32, i32) {
    %c0_i32 = arith.constant 0 : i32
    %c0_i32_0 = arith.constant 0 : i32
    return %arg0, %c0_i32 : i32, i32
  }
}

</mosaic_0001>

<bundles_post_ra>
// kernel: tpu_custom_call.1
= control target key start
LH: loop header
LB: loop body
LE: loop exit
PB: predicated region body
PF: predicated region fallthrough
CT: control target
= control target key end

     0   :  { %s1524_s30 = smov 0   ;;  %s1924_s0 = inlined_call_operand.vmem [shape: bf16[256,96], index: 0, kind: input, shape index: {}]   ;;  %s1925_s1 = inlined_call_operand.vmem [shape: bf16[96,64], index: 1, kind: input, shape index: {}]   ;;  %s1926_s2 = inlined_call_operand.vmem [shape: f32[1,64], index: 2, kind: input, shape index: {}]   ;;  %s1927_s3 = inlined_call_operand.vmem [shape: bf16[64,64], index: 3, kind: input, shape index: {}]   ;;  %s1928_s4 = inlined_call_operand.vmem [shape: f32[1,64], index: 4, kind: input, shape index: {}]   ;;  %s1929_s5 = inlined_call_operand.vmem [shape: bf16[64,32], index: 5, kind: input, shape index: {}]   ;;  %s1930_s6 = inlined_call_operand.vmem [shape: f32[1,32], index: 6, kind: input, shape index: {}]   ;;  %s1931_s7 = inlined_call_operand.vmem [shape: f32[1,32], index: 7, kind: input, shape index: {}]   ;;  %s1932_s8 = inlined_call_operand.vmem [shape: f32[1,32], index: 8, kind: input, shape index: {}]   ;;  %s1933_s9 = inlined_call_operand.vmem [shape: f32[256,32], index: 9, kind: output, shape index: {}]  }
   0x1 LB: > { %s1258_s10 = sadd.s32 4294967295, %s1471_s30   ;;  %p1262_p0 = scmp.ge.s32.totalorder %s1471_s30, 1  ;;  %s1471_s30 = sphi %s1524_s30, %s19_s30  }
   0x2   : > { %p288_p1 = scmp.lt.s32.totalorder %s1471_s30, 3 }
   0x4   : > { %p289_p2 = pnand %p1262_p0, %p288_p1 }
   0x5   : > { %s1263_s15 = sshll.u32 (!%p289_p2), %s1258_s10, 4 }
   0x6   : > { %292 = sbr.rel (%p289_p2) target bundleno = 823 (0x337), region = 56  ;;  %p325_p3 = scmp.lt.s32.totalorder (!%p289_p2), %s1263_s15, 31 }
   0xb   : > { %v1394_v0 = vld [vmem:[%s1925_s1 + $0x28] sm:$0xff]  ;;  %v1393_v1 = vld [vmem:[%s1925_s1 + $0x20] sm:$0xff]  ;;  %v1392_v2 = vld [vmem:[%s1925_s1 + $0x18] sm:$0xff]  ;;  %s1935_s15 = smov (!%p325_p3, %s1263_s15), 31  ;;  %vm445_vm0 = vcmask 785408   ;;  %vm579_vm1 = vcmask 523264  }
   0xc   : > { %472 = vmatpush.bf16.msra.mxu0 %v1394_v0  ;;  %1403 = vmatpush.bf16.msra.mxu3 %v1394_v0  ;;  %v1391_v3 = vld [vmem:[%s1925_s1 + $0x10] sm:$0xff]  ;;  %v1390_v4 = vld [vmem:[%s1925_s1 + $0x8] sm:$0xff]  ;;  %s1264_s22 = sshll.u32 %s1935_s15, 2  ;;  %v1389_v5 = vld [vmem:[%s1925_s1] sm:$0xff]  ;;  %vm786_vm2 = vcmask 261120   ;;  %s1266_s13 = sshll.u32 %s1935_s15, 3 }
   0xd   : > { %s328_s27 = scalar_lea.vmem %s1924_s0, %s1264_s22  ;;  %v1398_v14 = vld [vmem:[%s1927_s3 + $0x18] sm:$0xff]  ;;  %v1397_v15 = vld [vmem:[%s1927_s3 + $0x10] sm:$0xff]  ;;  %v1396_v16 = vld [vmem:[%s1927_s3 + $0x8] sm:$0xff]  ;;  %s1829_s19 = scalar_lea.vmem %s1933_s9, %s1266_s13 }
   0xe   : > { %v1381_v6 = vld [vmem:[%s328_s27] sm:$0xff]  ;;  %v1387_v7 = vld [vmem:[%s328_s27 + $0x30] sm:$0xff]  ;;  %v1382_v8 = vld [vmem:[%s328_s27 + $0x8] sm:$0xff]  ;;  %608 = vmatpush.bf16.msra.mxu1 %v1398_v14 }
   0xf   : > { %v1388_v9 = vld [vmem:[%s328_s27 + $0x38] sm:$0xff]  ;;  %v1383_v10 = vld [vmem:[%s328_s27 + $0x10] sm:$0xff]  ;;  %v1385_v12 = vld [vmem:[%s328_s27 + $0x20] sm:$0xff] }
  0x10   : > { %473 = vmatpush.bf16.msra.mxu0 %v1393_v1  ;;  %1404 = vmatpush.bf16.msra.mxu3 %v1393_v1  ;;  %v1384_v11 = vld [vmem:[%s328_s27 + $0x18] sm:$0xff]  ;;  %v1386_v13 = vld [vmem:[%s328_s27 + $0x28] sm:$0xff]  ;;  %v1395_v17 = vld [vmem:[%s1927_s3] sm:$0xff] }
  0x11   : > { %v1426_v19 = vld [vmem:[%s1926_s2] ss:$0 sm:$0xff] }
  0x12   : > { %609 = vmatpush.bf16.msra.mxu1 %v1397_v15 }
  0x14   : > { %474 = vmatpush.bf16.msra.mxu0 %v1392_v2  ;;  %1405 = vmatpush.bf16.msra.mxu3 %v1392_v2 }
  0x16   : > { %610 = vmatpush.bf16.msra.mxu1 %v1396_v16 }
  0x18   : > { %475 = vmatpush.bf16.msra.mxu0 %v1391_v3  ;;  %1406 = vmatpush.bf16.msra.mxu3 %v1391_v3 }
  0x1a   : > { %611 = vmatpush.bf16.msra.mxu1 %v1395_v17 }
  0x1c   : > { %476 = vmatpush.bf16.msra.mxu0 %v1390_v4  ;;  %1407 = vmatpush.bf16.msra.mxu3 %v1390_v4 }
  0x20   : > { %477 = vmatpush.bf16.msra.mxu0 %v1389_v5  ;;  %1408 = vmatpush.bf16.msra.mxu3 %v1389_v5 }
  0x23   : > { %1323 = vmatmul.msk.bf16.vlgmr.msra.gmra.mxu0 %vm445_vm0, %v1381_v6  ;;  %1329 = vmatmul.msk.bf16.vlgmr.msra.gmra.mxu3 %vm445_vm0, %v1387_v7 }
  0x24   : > { %1409 = vmatpush.bf16.msrb.mxu3 %v1398_v14  ;;  %v1399_v14 = vld [vmem:[%s1929_s5] sm:$0xff] }
  0x28   : > { %1410 = vmatpush.bf16.msrb.mxu3 %v1397_v15 }
  0x2c   : > { %1411 = vmatpush.bf16.msrb.mxu3 %v1396_v16  ;;  %v1427_v16 = vld [vmem:[%s1928_s4] ss:$0 sm:$0xff] }
  0x30   : > { %1412 = vmatpush.bf16.msrb.mxu3 %v1395_v17 }
  0x33   : > { %1324 = vmatmul.msk.bf16.gmra.mxu0 %vm445_vm0, %v1382_v8  ;;  %1330 = vmatmul.msk.bf16.gmra.mxu3 %vm445_vm0, %v1388_v9 }
  0x43   : > { %1325 = vmatmul.msk.bf16.gmra.mxu0 %vm445_vm0, %v1383_v10 }
  0x53   : > { %1326 = vmatmul.msk.bf16.gmra.mxu0 %vm445_vm0, %v1384_v11  ;;  %v1402_v11 = vld [vmem:[%s1929_s5 + $0x18] sm:$0xff] }
  0x54   : > { %741 = vmatpush.bf16.msra.mxu2 %v1402_v11  ;;  %1413 = vmatpush.bf16.msra.mxu3 %v1402_v11 }
  0x63   : > { %1327 = vmatmul.msk.bf16.gmra.mxu0 %vm445_vm0, %v1385_v12  ;;  %v1401_v12 = vld [vmem:[%s1929_s5 + $0x10] sm:$0xff] }
  0x64   : > { %742 = vmatpush.bf16.msra.mxu2 %v1401_v12  ;;  %1414 = vmatpush.bf16.msra.mxu3 %v1401_v12 }
  0x73   : > { %1328 = vmatmul.msk.bf16.gmra.mxu0 %vm445_vm0, %v1386_v13  ;;  %v1400_v13 = vld [vmem:[%s1929_s5 + $0x8] sm:$0xff] }
  0x74   : > { %743 = vmatpush.bf16.msra.mxu2 %v1400_v13  ;;  %1415 = vmatpush.bf16.msra.mxu3 %v1400_v13 }
  0x78   : > { %744 = vmatpush.bf16.msra.mxu2 %v1399_v14  ;;  %1416 = vmatpush.bf16.msra.mxu3 %v1399_v14 }
  0xa0   : > { %v479_v18 = vpop.f32.mrf.mxu0 }
  0xa1   : > { %v480_v20 = vadd.f32 %v1426_v19, %v479_v18 }
  0xa3   : > { %v519_v23 = vmax.f32 %v480_v20, 0.0 }
  0xa6   : > { %v509_v27 = vpop.f32.mrf.mxu3 }
  0xa7   : > { %v510_v31 = vadd.f32 %v1426_v19, %v509_v27 }
  0xa8   : > { %v481_v21 = vpop.f32.mrf.mxu0 }
  0xa9   : > { %v482_v22 = vadd.f32 %v1426_v19, %v481_v21  ;;  %v531_v36 = vmax.f32 %v510_v31, 0.0 }
  0xab   : > { %v520_v24 = vmax.f32 %v482_v22, 0.0 }
  0xad   : > { %v535_v25 = vpack.c.bf16 %v520_v24, %v519_v23 }
  0xae   : > { %v511_v32 = vpop.f32.mrf.mxu3 }
  0xaf   : > { %1347 = vmatmul.msk.bf16.vlgmr.msra.gmra.mxu1 %vm579_vm1, %v535_v25  ;;  %v512_v37 = vadd.f32 %v1426_v19, %v511_v32 }
  0xb0   : > { %v484_v26 = vpop.f32.mrf.mxu0 }
  0xb1   : > { %v485_v28 = vadd.f32 %v1426_v19, %v484_v26  ;;  %v532_v38 = vmax.f32 %v512_v37, 0.0 }
  0xb3   : > { %v521_v33 = vmax.f32 %v485_v28, 0.0  ;;  %v541_v40 = vpack.c.bf16 %v532_v38, %v531_v36 }
  0xb6   : > { %v514_v41 = vpop.f32.mrf.mxu3 }
  0xb7   : > { %v515_v43 = vadd.f32 %v1426_v19, %v514_v41 }
  0xb8   : > { %v486_v29 = vpop.f32.mrf.mxu0 }
  0xb9   : > { %v487_v30 = vadd.f32 %v1426_v19, %v486_v29  ;;  %v533_v49 = vmax.f32 %v515_v43, 0.0 }
  0xbb   : > { %v522_v34 = vmax.f32 %v487_v30, 0.0 }
  0xbd   : > { %v536_v35 = vpack.c.bf16 %v522_v34, %v521_v33 }
  0xbe   : > { %v516_v46 = vpop.f32.mrf.mxu3 }
  0xbf   : > { %1348 = vmatmul.msk.bf16.gmra.mxu1 %vm579_vm1, %v536_v35  ;;  %v517_v50 = vadd.f32 %v1426_v19, %v516_v46 }
  0xc0   : > { %v489_v39 = vpop.f32.mrf.mxu0 }
  0xc1   : > { %v490_v42 = vadd.f32 %v1426_v19, %v489_v39  ;;  %v534_v52 = vmax.f32 %v517_v50, 0.0 }
  0xc3   : > { %v523_v47 = vmax.f32 %v490_v42, 0.0  ;;  %v542_v53 = vpack.c.bf16 %v534_v52, %v533_v49 }
  0xc5   : > { %1354 = vmatmul.msk.bf16.vlgmr.msrb.gmra.mxu3 %vm579_vm1, %v542_v53 }
  0xc8   : > { %v491_v44 = vpop.f32.mrf.mxu0 }
  0xc9   : > { %v492_v45 = vadd.f32 %v1426_v19, %v491_v44 }
  0xcb   : > { %v524_v48 = vmax.f32 %v492_v45, 0.0 }
  0xcd   : > { %v537_v51 = vpack.c.bf16 %v524_v48, %v523_v47 }
  0xcf   : > { %1349 = vmatmul.msk.bf16.gmra.mxu1 %vm579_vm1, %v537_v51 }
  0xd0   : > { %v494_v54 = vpop.f32.mrf.mxu0 }
  0xd1   : > { %v495_v55 = vadd.f32 %v1426_v19, %v494_v54 }
  0xd3   : > { %v525_v58 = vmax.f32 %v495_v55, 0.0 }
  0xd8   : > { %v496_v56 = vpop.f32.mrf.mxu0 }
  0xd9   : > { %v497_v57 = vadd.f32 %v1426_v19, %v496_v56 }
  0xdb   : > { %v526_v59 = vmax.f32 %v497_v57, 0.0 }
  0xdd   : > { %v538_v60 = vpack.c.bf16 %v526_v59, %v525_v58 }
  0xdf   : > { %1350 = vmatmul.msk.bf16.gmra.mxu1 %vm579_vm1, %v538_v60 }
  0xe0   : > { %v499_v61 = vpop.f32.mrf.mxu0 }
  0xe1   : > { %v500_v62 = vadd.f32 %v1426_v19, %v499_v61 }
  0xe3   : > { %v527_v1 = vmax.f32 %v500_v62, 0.0 }
  0xe8   : > { %v501_v63 = vpop.f32.mrf.mxu0 }
  0xe9   : > { %v502_v0 = vadd.f32 %v1426_v19, %v501_v63 }
  0xeb   : > { %v528_v2 = vmax.f32 %v502_v0, 0.0 }
  0xed   : > { %v539_v3 = vpack.c.bf16 %v528_v2, %v527_v1 }
  0xef   : > { %1351 = vmatmul.msk.bf16.gmra.mxu1 %vm579_vm1, %v539_v3 }
  0xf0   : > { %v504_v4 = vpop.f32.mrf.mxu0 }
  0xf1   : > { %v505_v5 = vadd.f32 %v1426_v19, %v504_v4 }
  0xf3   : > { %v529_v8 = vmax.f32 %v505_v5, 0.0 }
  0xf8   : > { %v506_v6 = vpop.f32.mrf.mxu0 }
  0xf9   : > { %v507_v7 = vadd.f32 %v1426_v19, %v506_v6 }
  0xfb   : > { %v530_v9 = vmax.f32 %v507_v7, 0.0 }
  0xfd   : > { %v540_v10 = vpack.c.bf16 %v530_v9, %v529_v8  ;;  %v1613_v8 = vld [vmem:[%s1930_s6] ss:$0 sm:$0xff] }
  0xff   : > { %1352 = vmatmul.msk.bf16.gmra.mxu1 %vm579_vm1, %v540_v10 }
 0x10f   : > { %1353 = vmatmul.msk.bf16.gmra.mxu1 %vm579_vm1, %v541_v40 }
 0x12c   : > { %v613_v15 = vpop.f32.mrf.mxu1 }
 0x12d   : > { %v614_v17 = vadd.f32 %v1427_v16, %v613_v15 }
 0x12f   : > { %v653_v20 = vmax.f32 %v614_v17, 0.0 }
 0x134   : > { %v615_v18 = vpop.f32.mrf.mxu1 }
 0x135   : > { %v616_v19 = vadd.f32 %v1427_v16, %v615_v18 }
 0x137   : > { %v654_v21 = vmax.f32 %v616_v19, 0.0 }
 0x139   : > { %v669_v22 = vpack.c.bf16 %v654_v21, %v653_v20 }
 0x13b   : > { %1371 = vmatmul.msk.bf16.vlgmr.msra.gmra.mxu2 %vm579_vm1, %v669_v22 }
 0x13c   : > { %v618_v23 = vpop.f32.mrf.mxu1 }
 0x13d   : > { %v619_v24 = vadd.f32 %v1427_v16, %v618_v23 }
 0x13f   : > { %v655_v27 = vmax.f32 %v619_v24, 0.0 }
 0x144   : > { %v620_v25 = vpop.f32.mrf.mxu1 }
 0x145   : > { %v621_v26 = vadd.f32 %v1427_v16, %v620_v25 }
 0x147   : > { %v656_v28 = vmax.f32 %v621_v26, 0.0 }
 0x148   : > { %v648_v33 = vpop.f32.mrf.mxu3 }
 0x149   : > { %v670_v29 = vpack.c.bf16 %v656_v28, %v655_v27  ;;  %v649_v38 = vadd.f32 %v1427_v16, %v648_v33 }
 0x14b   : > { %1372 = vmatmul.msk.bf16.gmra.mxu2 %vm579_vm1, %v670_v29  ;;  %v667_v41 = vmax.f32 %v649_v38, 0.0 }
 0x14c   : > { %v623_v30 = vpop.f32.mrf.mxu1 }
 0x14d   : > { %v624_v31 = vadd.f32 %v1427_v16, %v623_v30 }
 0x14f   : > { %v657_v35 = vmax.f32 %v624_v31, 0.0 }
 0x150   : > { %v650_v40 = vpop.f32.mrf.mxu3 }
 0x151   : > { %v651_v42 = vadd.f32 %v1427_v16, %v650_v40 }
 0x153   : > { %v668_v43 = vmax.f32 %v651_v42, 0.0 }
 0x154   : > { %v625_v32 = vpop.f32.mrf.mxu1 }
 0x155   : > { %v626_v34 = vadd.f32 %v1427_v16, %v625_v32  ;;  %v676_v44 = vpack.c.bf16 %v668_v43, %v667_v41 }
 0x157   : > { %v658_v36 = vmax.f32 %v626_v34, 0.0  ;;  %1378 = vmatmul.msk.bf16.vlgmr.msra.gmra.mxu3 %vm579_vm1, %v676_v44 }
 0x159   : > { %v671_v37 = vpack.c.bf16 %v658_v36, %v657_v35 }
 0x15b   : > { %1373 = vmatmul.msk.bf16.gmra.mxu2 %vm579_vm1, %v671_v37 }
 0x15c   : > { %v628_v39 = vpop.f32.mrf.mxu1 }
 0x15d   : > { %v629_v45 = vadd.f32 %v1427_v16, %v628_v39 }
 0x15f   : > { %v659_v48 = vmax.f32 %v629_v45, 0.0 }
 0x164   : > { %v630_v46 = vpop.f32.mrf.mxu1 }
 0x165   : > { %v631_v47 = vadd.f32 %v1427_v16, %v630_v46  ;;  %v1473_v46 = vmov 32.0  }
 0x166   : > { %1431 = vrcp.f32 %v1473_v46 }
 0x167   : > { %v660_v49 = vmax.f32 %v631_v47, 0.0 }
 0x169   : > { %v672_v50 = vpack.c.bf16 %v660_v49, %v659_v48 }
 0x16b   : > { %1374 = vmatmul.msk.bf16.gmra.mxu2 %vm579_vm1, %v672_v50 }
 0x16c   : > { %v633_v51 = vpop.f32.mrf.mxu1  ;;  %v1432_v50 = vpop.eup %1431 }
 0x16d   : > { %v634_v52 = vadd.f32 %v1427_v16, %v633_v51  ;;  %vm840_vm3 = vweird.f32 %v1432_v50 }
 0x16f   : > { %v661_v55 = vmax.f32 %v634_v52, 0.0 }
 0x174   : > { %v635_v53 = vpop.f32.mrf.mxu1 }
 0x175   : > { %v636_v54 = vadd.f32 %v1427_v16, %v635_v53 }
 0x177   : > { %v662_v56 = vmax.f32 %v636_v54, 0.0  ;;  %v836_v54 = vmul.f32 32.0, %v1432_v50 }
 0x179   : > { %v673_v57 = vpack.c.bf16 %v662_v56, %v661_v55 }
 0x17b   : > { %1375 = vmatmul.msk.bf16.gmra.mxu2 %vm579_vm1, %v673_v57 }
 0x17c   : > { %v638_v58 = vpop.f32.mrf.mxu1 }
 0x17d   : > { %v639_v59 = vadd.f32 %v1427_v16, %v638_v58  ;;  %v837_v58 = vsub.f32 1.0, %v836_v54 }
 0x17f   : > { %v663_v62 = vmax.f32 %v639_v59, 0.0 }
 0x184   : > { %v640_v60 = vpop.f32.mrf.mxu1 }
 0x185   : > { %v641_v61 = vadd.f32 %v1427_v16, %v640_v60 }
 0x187   : > { %v664_v63 = vmax.f32 %v641_v61, 0.0  ;;  %v838_v61 = vmul.f32 %v1432_v50, %v837_v58 }
 0x189   : > { %v674_v0 = vpack.c.bf16 %v664_v63, %v663_v62  ;;  %v839_v62 = vadd.f32 %v1432_v50, %v838_v61 }
 0x18b   : > { %1376 = vmatmul.msk.bf16.gmra.mxu2 %vm579_vm1, %v674_v0  ;;  %v1695_v63 = vsel %vm840_vm3, %v1432_v50, %v839_v62 }
 0x18c   : > { %v643_v1 = vpop.f32.mrf.mxu1 }
 0x18d   : > { %v644_v2 = vadd.f32 %v1427_v16, %v643_v1 }
 0x18f   : > { %v665_v5 = vmax.f32 %v644_v2, 0.0 }
 0x194   : > { %v645_v3 = vpop.f32.mrf.mxu1 }
 0x195   : > { %v646_v4 = vadd.f32 %v1427_v16, %v645_v3 }
 0x197   : > { %v666_v6 = vmax.f32 %v646_v4, 0.0 }
 0x199   : > { %v675_v7 = vpack.c.bf16 %v666_v6, %v665_v5 }
 0x19b   : > { %1377 = vmatmul.msk.bf16.gmra.mxu2 %vm579_vm1, %v675_v7 }
 0x1be   : > { %v746_v9 = vpop.f32.mrf.mxu2 }
 0x1bf   : > { %v1616_v10 = vadd.f32 %v1613_v8, %v746_v9 }
 0x1c1   : > { %v787_v11 = vsel %vm786_vm2, %v1616_v10, 0.0 }
 0x1c2   : > { %788 = vadd.xlane.f32.xlu0 %v787_v11 }
 0x1c6   : > { %v748_v12 = vpop.f32.mrf.mxu2 }
 0x1c7   : > { %v1621_v13 = vadd.f32 %v1613_v8, %v748_v12 }
 0x1c9   : > { %v790_v14 = vsel %vm786_vm2, %v1621_v13, 0.0 }
 0x1ca   : > { %791 = vadd.xlane.f32.xlu0 %v790_v14 }
 0x1ce   : > { %v751_v15 = vpop.f32.mrf.mxu2 }
 0x1cf   : > { %v1626_v16 = vadd.f32 %v1613_v8, %v751_v15 }
 0x1d1   : > { %v793_v17 = vsel %vm786_vm2, %v1626_v16, 0.0 }
 0x1d2   : > { %794 = vadd.xlane.f32.xlu1 %v793_v17 }
 0x1d6   : > { %v753_v18 = vpop.f32.mrf.mxu2 }
 0x1d7   : > { %v1631_v19 = vadd.f32 %v1613_v8, %v753_v18 }
 0x1d9   : > { %v796_v20 = vsel %vm786_vm2, %v1631_v19, 0.0 }
 0x1da   : > { %797 = vadd.xlane.f32.xlu1 %v796_v20  ;;  %v781_v44 = vpop.f32.mrf.mxu3 }
 0x1db   : > { %v1676_v47 = vadd.f32 %v1613_v8, %v781_v44 }
 0x1dd   : > { %v829_v51 = vsel %vm786_vm2, %v1676_v47, 0.0 }
 0x1de   : > { %v756_v21 = vpop.f32.mrf.mxu2 }
 0x1df   : > { %v1636_v22 = vadd.f32 %v1613_v8, %v756_v21 }
 0x1e1   : > { %v799_v23 = vsel %vm786_vm2, %v1636_v22, 0.0 }
 0x1e2   : > { %800 = vadd.xlane.f32.xlu2 %v799_v23  ;;  %v783_v53 = vpop.f32.mrf.mxu3 }
 0x1e3   : > { %v1686_v55 = vadd.f32 %v1613_v8, %v783_v53 }
 0x1e5   : > { %v832_v60 = vsel %vm786_vm2, %v1686_v55, 0.0 }
 0x1e6   : > { %v758_v24 = vpop.f32.mrf.mxu2 }
 0x1e7   : > { %v1641_v25 = vadd.f32 %v1613_v8, %v758_v24 }
 0x1e9   : > { %v802_v26 = vsel %vm786_vm2, %v1641_v25, 0.0 }
 0x1ea   : > { %803 = vadd.xlane.f32.xlu2 %v802_v26 }
 0x1ee   : > { %v761_v27 = vpop.f32.mrf.mxu2 }
 0x1ef   : > { %v1646_v28 = vadd.f32 %v1613_v8, %v761_v27 }
 0x1f1   : > { %v805_v29 = vsel %vm786_vm2, %v1646_v28, 0.0 }
 0x1f2   : > { %806 = vadd.xlane.f32.xlu0 %v805_v29 }
 0x1f6   : > { %v763_v30 = vpop.f32.mrf.mxu2 }
 0x1f7   : > { %v1651_v31 = vadd.f32 %v1613_v8, %v763_v30 }
 0x1f9   : > { %v808_v32 = vsel %vm786_vm2, %v1651_v31, 0.0 }
 0x1fa   : > { %809 = vadd.xlane.f32.xlu1 %v808_v32 }
 0x1fe   : > { %v766_v33 = vpop.f32.mrf.mxu2 }
 0x1ff   : > { %v1656_v34 = vadd.f32 %v1613_v8, %v766_v33 }
 0x201   : > { %v811_v35 = vsel %vm786_vm2, %v1656_v34, 0.0 }
 0x202   : > { %812 = vadd.xlane.f32.xlu2 %v811_v35 }
 0x206   : > { %v768_v36 = vpop.f32.mrf.mxu2 }
 0x207   : > { %v1661_v37 = vadd.f32 %v1613_v8, %v768_v36 }
 0x209   : > { %v814_v38 = vsel %vm786_vm2, %v1661_v37, 0.0 }
 0x20a   : > { %815 = vadd.xlane.f32.xlu0 %v814_v38 }
 0x20e   : > { %v771_v39 = vpop.f32.mrf.mxu2 }
 0x20f   : > { %v1666_v40 = vadd.f32 %v1613_v8, %v771_v39 }
 0x211   : > { %v817_v41 = vsel %vm786_vm2, %v1666_v40, 0.0 }
 0x212   : > { %818 = vadd.xlane.f32.xlu1 %v817_v41 }
 0x216   : > { %v773_v42 = vpop.f32.mrf.mxu2 }
 0x217   : > { %v1671_v43 = vadd.f32 %v1613_v8, %v773_v42 }
 0x219   : > { %v820_v45 = vsel %vm786_vm2, %v1671_v43, 0.0 }
 0x21a   : > { %821 = vadd.xlane.f32.xlu2 %v820_v45 }
 0x21e   : > { %v776_v48 = vpop.f32.mrf.mxu2 }
 0x21f   : > { %v1679_v49 = vadd.f32 %v1613_v8, %v776_v48 }
 0x221   : > { %v823_v52 = vsel %vm786_vm2, %v1679_v49, 0.0 }
 0x222   : > { %830 = vadd.xlane.f32.xlu2 %v829_v51  ;;  %824 = vadd.xlane.f32.xlu0 %v823_v52 }
 0x226   : > { %v778_v56 = vpop.f32.mrf.mxu2 }
 0x227   : > { %v1689_v57 = vadd.f32 %v1613_v8, %v778_v56 }
 0x229   : > { %v826_v59 = vsel %vm786_vm2, %v1689_v57, 0.0 }
 0x22a   : > { %827 = vadd.xlane.f32.xlu1 %v826_v59  ;;  %833 = vadd.xlane.f32.xlu0 %v832_v60 }
 0x235   : > { %v789_v0 = vpop.xlane.xlu0 %788 }
 0x236   : > { %v842_v1 = vmul.f32 %v1695_v63, %v789_v0 }
 0x238   : > { %v1699_v2 = vsub.f32 %v1616_v10, %v842_v1 }
 0x23a   : > { %v874_v3 = vmul.f32 %v1699_v2, %v1699_v2 }
 0x23c   : > { %v890_v4 = vsel %vm786_vm2, %v874_v3, 0.0 }
 0x23d   : > { %891 = vadd.xlane.f32.xlu1 %v890_v4  ;;  %v792_v5 = vpop.xlane.xlu0 %791 }
 0x23e   : > { %v843_v6 = vmul.f32 %v1695_v63, %v792_v5 }
 0x240   : > { %v1706_v7 = vsub.f32 %v1621_v13, %v843_v6 }
 0x242   : > { %v875_v8 = vmul.f32 %v1706_v7, %v1706_v7 }
 0x244   : > { %v893_v9 = vsel %vm786_vm2, %v875_v8, 0.0 }
 0x245   : > { %v795_v11 = vpop.xlane.xlu1 %794  ;;  %894 = vadd.xlane.f32.xlu2 %v893_v9 }
 0x246   : > { %v844_v10 = vmul.f32 %v1695_v63, %v795_v11 }
 0x248   : > { %v1713_v12 = vsub.f32 %v1626_v16, %v844_v10 }
 0x24a   : > { %v876_v14 = vmul.f32 %v1713_v12, %v1713_v12 }
 0x24c   : > { %v896_v15 = vsel %vm786_vm2, %v876_v14, 0.0 }
 0x24d   : > { %v798_v17 = vpop.xlane.xlu1 %797  ;;  %897 = vadd.xlane.f32.xlu0 %v896_v15 }
 0x24e   : > { %v845_v13 = vmul.f32 %v1695_v63, %v798_v17 }
 0x250   : > { %v1720_v18 = vsub.f32 %v1631_v19, %v845_v13 }
 0x252   : > { %v877_v20 = vmul.f32 %v1720_v18, %v1720_v18 }
 0x254   : > { %v899_v21 = vsel %vm786_vm2, %v877_v20, 0.0 }
 0x255   : > { %v801_v23 = vpop.xlane.xlu2 %800  ;;  %900 = vadd.xlane.f32.xlu1 %v899_v21 }
 0x256   : > { %v846_v16 = vmul.f32 %v1695_v63, %v801_v23 }
 0x258   : > { %v1727_v24 = vsub.f32 %v1636_v22, %v846_v16 }
 0x25a   : > { %v878_v26 = vmul.f32 %v1727_v24, %v1727_v24 }
 0x25c   : > { %v902_v27 = vsel %vm786_vm2, %v878_v26, 0.0 }
 0x25d   : > { %v804_v29 = vpop.xlane.xlu2 %803  ;;  %903 = vadd.xlane.f32.xlu2 %v902_v27 }
 0x25e   : > { %v847_v19 = vmul.f32 %v1695_v63, %v804_v29 }
 0x260   : > { %v1734_v30 = vsub.f32 %v1641_v25, %v847_v19 }
 0x262   : > { %v879_v32 = vmul.f32 %v1734_v30, %v1734_v30 }
 0x264   : > { %v905_v33 = vsel %vm786_vm2, %v879_v32, 0.0 }
 0x265   : > { %906 = vadd.xlane.f32.xlu0 %v905_v33  ;;  %v807_v22 = vpop.xlane.xlu0 %806 }
 0x266   : > { %v848_v35 = vmul.f32 %v1695_v63, %v807_v22 }
 0x268   : > { %v1741_v36 = vsub.f32 %v1646_v28, %v848_v35 }
 0x26a   : > { %v880_v38 = vmul.f32 %v1741_v36, %v1741_v36 }
 0x26c   : > { %v908_v39 = vsel %vm786_vm2, %v880_v38, 0.0 }
 0x26d   : > { %v810_v41 = vpop.xlane.xlu1 %809  ;;  %909 = vadd.xlane.f32.xlu1 %v908_v39 }
 0x26e   : > { %v849_v25 = vmul.f32 %v1695_v63, %v810_v41 }
 0x270   : > { %v1748_v42 = vsub.f32 %v1651_v31, %v849_v25 }
 0x272   : > { %v881_v44 = vmul.f32 %v1748_v42, %v1748_v42 }
 0x274   : > { %v911_v45 = vsel %vm786_vm2, %v881_v44, 0.0 }
 0x275   : > { %v813_v46 = vpop.xlane.xlu2 %812  ;;  %912 = vadd.xlane.f32.xlu2 %v911_v45 }
 0x276   : > { %v850_v28 = vmul.f32 %v1695_v63, %v813_v46 }
 0x278   : > { %v1755_v48 = vsub.f32 %v1656_v34, %v850_v28 }
 0x27a   : > { %v882_v50 = vmul.f32 %v1755_v48, %v1755_v48 }
 0x27c   : > { %v914_v51 = vsel %vm786_vm2, %v882_v50, 0.0  ;;  %v1815_v50 = vld [vmem:[%s1931_s7] ss:$0 sm:$0xff] }
 0x27d   : > { %915 = vadd.xlane.f32.xlu0 %v914_v51  ;;  %v816_v31 = vpop.xlane.xlu0 %815 }
 0x27e   : > { %v851_v52 = vmul.f32 %v1695_v63, %v816_v31 }
 0x280   : > { %v1762_v53 = vsub.f32 %v1661_v37, %v851_v52  ;;  %v1821_v52 = vld [vmem:[%s1932_s8] ss:$0 sm:$0xff] }
 0x282   : > { %v883_v54 = vmul.f32 %v1762_v53, %v1762_v53 }
 0x284   : > { %v917_v56 = vsel %vm786_vm2, %v883_v54, 0.0 }
 0x285   : > { %v819_v58 = vpop.xlane.xlu1 %818  ;;  %918 = vadd.xlane.f32.xlu1 %v917_v56 }
 0x286   : > { %v852_v34 = vmul.f32 %v1695_v63, %v819_v58 }
 0x288   : > { %v1769_v59 = vsub.f32 %v1666_v40, %v852_v34 }
 0x28a   : > { %v884_v60 = vmul.f32 %v1769_v59, %v1769_v59 }
 0x28c   : > { %v920_v61 = vsel %vm786_vm2, %v884_v60, 0.0 }
 0x28d   : > { %v822_v62 = vpop.xlane.xlu2 %821  ;;  %921 = vadd.xlane.f32.xlu2 %v920_v61 }
 0x28e   : > { %v853_v37 = vmul.f32 %v1695_v63, %v822_v62 }
 0x290   : > { %v1776_v0 = vsub.f32 %v1671_v43, %v853_v37 }
 0x292   : > { %v885_v1 = vmul.f32 %v1776_v0, %v1776_v0 }
 0x294   : > { %v923_v3 = vsel %vm786_vm2, %v885_v1, 0.0 }
 0x295   : > { %v831_v4 = vpop.xlane.xlu2 %830  ;;  %924 = vadd.xlane.f32.xlu0 %v923_v3  ;;  %v825_v40 = vpop.xlane.xlu0 %824 }
 0x296   : > { %v856_v5 = vmul.f32 %v1695_v63, %v831_v4  ;;  %v854_v6 = vmul.f32 %v1695_v63, %v825_v40 }
 0x298   : > { %v1784_v8 = vsub.f32 %v1676_v47, %v856_v5  ;;  %v1787_v9 = vsub.f32 %v1679_v49, %v854_v6 }
 0x29a   : > { %v888_v43 = vmul.f32 %v1784_v8, %v1784_v8  ;;  %v886_v11 = vmul.f32 %v1787_v9, %v1787_v9 }
 0x29c   : > { %v932_v10 = vsel %vm786_vm2, %v888_v43, 0.0  ;;  %v926_v14 = vsel %vm786_vm2, %v886_v11, 0.0 }
 0x29d   : > { %v828_v15 = vpop.xlane.xlu1 %827  ;;  %933 = vadd.xlane.f32.xlu0 %v932_v10  ;;  %927 = vadd.xlane.f32.xlu1 %v926_v14  ;;  %v834_v17 = vpop.xlane.xlu0 %833 }
 0x29e   : > { %v855_v47 = vmul.f32 %v1695_v63, %v828_v15  ;;  %v857_v13 = vmul.f32 %v1695_v63, %v834_v17 }
 0x2a0   : > { %v1798_v49 = vsub.f32 %v1689_v57, %v855_v47  ;;  %v1801_v20 = vsub.f32 %v1686_v55, %v857_v13 }
 0x2a2   : > { %v887_v21 = vmul.f32 %v1798_v49, %v1798_v49  ;;  %v889_v23 = vmul.f32 %v1801_v20, %v1801_v20 }
 0x2a4   : > { %v929_v16 = vsel %vm786_vm2, %v887_v21, 0.0  ;;  %v935_v26 = vsel %vm786_vm2, %v889_v23, 0.0 }
 0x2a5   : > { %930 = vadd.xlane.f32.xlu2 %v929_v16  ;;  %936 = vadd.xlane.f32.xlu1 %v935_v26 }
 0x2b0   : > { %v892_v27 = vpop.xlane.xlu1 %891 }
 0x2b1   : > { %v938_v29 = vmul.f32 %v892_v27, %v1695_v63 }
 0x2b3   : > { %v954_v57 = vadd.f32 1e-05, %v938_v29 }
 0x2b5   : > { %1433 = vrsqrt.f32 %v954_v57  ;;  %vm976_vm5 = vweird.f32 %v954_v57 }
 0x2b8   : > { %v895_v19 = vpop.xlane.xlu2 %894 }
 0x2b9   : > { %v939_v55 = vmul.f32 %v895_v19, %v1695_v63 }
 0x2bb   : > { %v1434_v32 = vpop.eup %1433  ;;  %v955_v33 = vadd.f32 1e-05, %v939_v55 }
 0x2bc   : > { %v971_v22 = vmul.f32 %v1434_v32, %v954_v57  ;;  %vm977_vm4 = vweird.f32 %v1434_v32 }
 0x2bd   : > { %1435 = vrsqrt.f32 %v955_v33  ;;  %vm978_vm6 = vmor %vm976_vm5, %vm977_vm4  ;;  %vm986_vm8 = vweird.f32 %v955_v33 }
 0x2be   : > { %v972_v35 = vmul.f32 %v1434_v32, %v971_v22 }
 0x2c0   : > { %v973_v38 = vmul.f32 0.5, %v972_v35  ;;  %v898_v39 = vpop.xlane.xlu0 %897 }
 0x2c1   : > { %v940_v41 = vmul.f32 %v898_v39, %v1695_v63 }
 0x2c2   : > { %v974_v25 = vsub.f32 1.5, %v973_v38 }
 0x2c3   : > { %v1436_v44 = vpop.eup %1435  ;;  %v956_v45 = vadd.f32 1e-05, %v940_v41 }
 0x2c4   : > { %v975_v46 = vmul.f32 %v1434_v32, %v974_v25  ;;  %v981_v28 = vmul.f32 %v1436_v44, %v955_v33  ;;  %vm987_vm7 = vweird.f32 %v1436_v44 }
 0x2c5   : > { %1437 = vrsqrt.f32 %v956_v45  ;;  %vm988_vm9 = vmor %vm986_vm8, %vm987_vm7  ;;  %vm996_vm11 = vweird.f32 %v956_v45 }
 0x2c6   : > { %v979_v51 = vsel %vm978_vm6, %v1434_v32, %v975_v46  ;;  %v982_v31 = vmul.f32 %v1436_v44, %v981_v28 }
 0x2c7   : > { %v1130_v54 = vmul.f32 %v979_v51, %v1699_v2 }
 0x2c8   : > { %v983_v56 = vmul.f32 0.5, %v982_v31  ;;  %v901_v58 = vpop.xlane.xlu1 %900 }
 0x2c9   : > { %v1150_v34 = vmul.f32 %v1815_v50, %v1130_v54  ;;  %v941_v60 = vmul.f32 %v901_v58, %v1695_v63 }
 0x2ca   : > { %v984_v61 = vsub.f32 1.5, %v983_v56 }
 0x2cb   : > { %v1438_v62 = vpop.eup %1437  ;;  %v1170_v37 = vadd.f32 %v1821_v52, %v1150_v34  ;;  %v957_v1 = vadd.f32 1e-05, %v941_v60 }
 0x2cc   : > { %v985_v3 = vmul.f32 %v1436_v44, %v984_v61  ;;  %v991_v2 = vmul.f32 %v1438_v62, %v956_v45  ;;  %vm997_vm10 = vweird.f32 %v1438_v62 }
 0x2cd   : > { %1186 = vst.msk [vmem:[%s1829_s19] sm:$0xff] %vm786_vm2, %v1170_v37  ;;  %1439 = vrsqrt.f32 %v957_v1  ;;  %vm998_vm12 = vmor %vm996_vm11, %vm997_vm10  ;;  %vm1006_vm14 = vweird.f32 %v957_v1 }
 0x2ce   : > { %v989_v4 = vsel %vm988_vm9, %v1436_v44, %v985_v3  ;;  %v992_v40 = vmul.f32 %v1438_v62, %v991_v2 }
 0x2cf   : > { %v1131_v5 = vmul.f32 %v989_v4, %v1706_v7 }
 0x2d0   : > { %v993_v6 = vmul.f32 0.5, %v992_v40  ;;  %v904_v43 = vpop.xlane.xlu2 %903 }
 0x2d1   : > { %v1151_v11 = vmul.f32 %v1815_v50, %v1131_v5  ;;  %v942_v10 = vmul.f32 %v904_v43, %v1695_v63 }
 0x2d2   : > { %v994_v14 = vsub.f32 1.5, %v993_v6 }
 0x2d3   : > { %v1440_v15 = vpop.eup %1439  ;;  %v1171_v17 = vadd.f32 %v1821_v52, %v1151_v11  ;;  %v958_v47 = vadd.f32 1e-05, %v942_v10 }
 0x2d4   : > { %v995_v13 = vmul.f32 %v1438_v62, %v994_v14  ;;  %v1001_v21 = vmul.f32 %v1440_v15, %v957_v1  ;;  %vm1007_vm13 = vweird.f32 %v1440_v15 }
 0x2d5   : > { %1187 = vst.msk [vmem:[%s1829_s19 + $0x8] sm:$0xff] %vm786_vm2, %v1171_v17  ;;  %1441 = vrsqrt.f32 %v958_v47  ;;  %vm1008_vm15 = vmor %vm1006_vm14, %vm1007_vm13  ;;  %vm1016_vm1 = vweird.f32 %v958_v47 }
 0x2d6   : > { %v999_v7 = vsel %vm998_vm12, %v1438_v62, %v995_v13  ;;  %v1002_v23 = vmul.f32 %v1440_v15, %v1001_v21 }
 0x2d7   : > { %v1132_v16 = vmul.f32 %v999_v7, %v1713_v12 }
 0x2d8   : > { %v1003_v26 = vmul.f32 0.5, %v1002_v23  ;;  %v907_v27 = vpop.xlane.xlu0 %906 }
 0x2d9   : > { %v1152_v29 = vmul.f32 %v1815_v50, %v1132_v16  ;;  %v943_v57 = vmul.f32 %v907_v27, %v1695_v63 }
 0x2da   : > { %v1004_v19 = vsub.f32 1.5, %v1003_v26 }
 0x2db   : > { %v1442_v55 = vpop.eup %1441  ;;  %v1172_v32 = vadd.f32 %v1821_v52, %v1152_v29  ;;  %v959_v33 = vadd.f32 1e-05, %v943_v57 }
 0x2dc   : > { %v1005_v22 = vmul.f32 %v1440_v15, %v1004_v19  ;;  %v1011_v35 = vmul.f32 %v1442_v55, %v958_v47  ;;  %vm1017_vm0 = vweird.f32 %v1442_v55 }
 0x2dd   : > { %1188 = vst.msk [vmem:[%s1829_s19 + $0x10] sm:$0xff] %vm786_vm2, %v1172_v32  ;;  %1443 = vrsqrt.f32 %v959_v33  ;;  %vm1018_vm3 = vmor %vm1016_vm1, %vm1017_vm0  ;;  %vm1026_vm5 = vweird.f32 %v959_v33 }
 0x2de   : > { %v1009_v12 = vsel %vm1008_vm15, %v1440_v15, %v1005_v22  ;;  %v1012_v38 = vmul.f32 %v1442_v55, %v1011_v35 }
 0x2df   : > { %v1133_v39 = vmul.f32 %v1009_v12, %v1720_v18 }
 0x2e0   : > { %v1013_v41 = vmul.f32 0.5, %v1012_v38  ;;  %v910_v25 = vpop.xlane.xlu1 %909 }
 0x2e1   : > { %v1153_v44 = vmul.f32 %v1815_v50, %v1133_v39  ;;  %v944_v45 = vmul.f32 %v910_v25, %v1695_v63 }
 0x2e2   : > { %v1014_v46 = vsub.f32 1.5, %v1013_v41 }
 0x2e3   : > { %v1444_v28 = vpop.eup %1443  ;;  %v1173_v51 = vadd.f32 %v1821_v52, %v1153_v44  ;;  %v960_v31 = vadd.f32 1e-05, %v944_v45 }
 0x2e4   : > { %v1015_v54 = vmul.f32 %v1442_v55, %v1014_v46  ;;  %v1021_v56 = vmul.f32 %v1444_v28, %v959_v33  ;;  %vm1027_vm4 = vweird.f32 %v1444_v28 }
 0x2e5   : > { %1189 = vst.msk [vmem:[%s1829_s19 + $0x18] sm:$0xff] %vm786_vm2, %v1173_v51  ;;  %1445 = vrsqrt.f32 %v960_v31  ;;  %vm1028_vm6 = vmor %vm1026_vm5, %vm1027_vm4  ;;  %vm1036_vm8 = vweird.f32 %v960_v31 }
 0x2e6   : > { %v1019_v18 = vsel %vm1018_vm3, %v1442_v55, %v1015_v54  ;;  %v1022_v58 = vmul.f32 %v1444_v28, %v1021_v56 }
 0x2e7   : > { %v1134_v34 = vmul.f32 %v1019_v18, %v1727_v24 }
 0x2e8   : > { %v1023_v60 = vmul.f32 0.5, %v1022_v58  ;;  %v913_v61 = vpop.xlane.xlu2 %912 }
 0x2e9   : > { %v1154_v62 = vmul.f32 %v1815_v50, %v1134_v34  ;;  %v945_v37 = vmul.f32 %v913_v61, %v1695_v63 }
 0x2ea   : > { %v1024_v1 = vsub.f32 1.5, %v1023_v60 }
 0x2eb   : > { %v1446_v3 = vpop.eup %1445  ;;  %v1174_v2 = vadd.f32 %v1821_v52, %v1154_v62  ;;  %v961_v4 = vadd.f32 1e-05, %v945_v37 }
 0x2ec   : > { %v1025_v40 = vmul.f32 %v1444_v28, %v1024_v1  ;;  %v1031_v5 = vmul.f32 %v1446_v3, %v960_v31  ;;  %vm1037_vm7 = vweird.f32 %v1446_v3 }
 0x2ed   : > { %1190 = vst.msk [vmem:[%s1829_s19 + $0x20] sm:$0xff] %vm786_vm2, %v1174_v2  ;;  %1447 = vrsqrt.f32 %v961_v4  ;;  %vm1038_vm9 = vmor %vm1036_vm8, %vm1037_vm7  ;;  %vm1046_vm11 = vweird.f32 %v961_v4 }
 0x2ee   : > { %v1029_v24 = vsel %vm1028_vm6, %v1444_v28, %v1025_v40  ;;  %v1032_v6 = vmul.f32 %v1446_v3, %v1031_v5 }
 0x2ef   : > { %v1135_v43 = vmul.f32 %v1029_v24, %v1734_v30 }
 0x2f0   : > { %v1033_v11 = vmul.f32 0.5, %v1032_v6  ;;  %v916_v10 = vpop.xlane.xlu0 %915 }
 0x2f1   : > { %v1155_v14 = vmul.f32 %v1815_v50, %v1135_v43  ;;  %v946_v15 = vmul.f32 %v916_v10, %v1695_v63 }
 0x2f2   : > { %v1034_v17 = vsub.f32 1.5, %v1033_v11 }
 0x2f3   : > { %v1448_v47 = vpop.eup %1447  ;;  %v1175_v13 = vadd.f32 %v1821_v52, %v1155_v14  ;;  %v962_v21 = vadd.f32 1e-05, %v946_v15 }
 0x2f4   : > { %v1035_v7 = vmul.f32 %v1446_v3, %v1034_v17  ;;  %v1041_v23 = vmul.f32 %v1448_v47, %v961_v4  ;;  %vm1047_vm10 = vweird.f32 %v1448_v47 }
 0x2f5   : > { %1191 = vst.msk [vmem:[%s1829_s19 + $0x28] sm:$0xff] %vm786_vm2, %v1175_v13  ;;  %1449 = vrsqrt.f32 %v962_v21  ;;  %vm1048_vm12 = vmor %vm1046_vm11, %vm1047_vm10  ;;  %vm1056_vm14 = vweird.f32 %v962_v21 }
 0x2f6   : > { %v1039_v30 = vsel %vm1038_vm9, %v1446_v3, %v1035_v7  ;;  %v1042_v16 = vmul.f32 %v1448_v47, %v1041_v23 }
 0x2f7   : > { %v1136_v26 = vmul.f32 %v1039_v30, %v1741_v36 }
 0x2f8   : > { %v1043_v27 = vmul.f32 0.5, %v1042_v16  ;;  %v919_v29 = vpop.xlane.xlu1 %918 }
 0x2f9   : > { %v1156_v57 = vmul.f32 %v1815_v50, %v1136_v26  ;;  %v947_v19 = vmul.f32 %v919_v29, %v1695_v63 }
 0x2fa   : > { %v1044_v55 = vsub.f32 1.5, %v1043_v27 }
 0x2fb   : > { %v1450_v32 = vpop.eup %1449  ;;  %v1176_v33 = vadd.f32 %v1821_v52, %v1156_v57  ;;  %v963_v22 = vadd.f32 1e-05, %v947_v19 }
 0x2fc   : > { %v1045_v35 = vmul.f32 %v1448_v47, %v1044_v55  ;;  %v1051_v12 = vmul.f32 %v1450_v32, %v962_v21  ;;  %vm1057_vm13 = vweird.f32 %v1450_v32 }
 0x2fd   : > { %1192 = vst.msk [vmem:[%s1829_s19 + $0x30] sm:$0xff] %vm786_vm2, %v1176_v33  ;;  %1451 = vrsqrt.f32 %v963_v22  ;;  %vm1058_vm15 = vmor %vm1056_vm14, %vm1057_vm13  ;;  %vm1066_vm1 = vweird.f32 %v963_v22 }
 0x2fe   : > { %v1049_v36 = vsel %vm1048_vm12, %v1448_v47, %v1045_v35  ;;  %v1052_v38 = vmul.f32 %v1450_v32, %v1051_v12 }
 0x2ff   : > { %v1137_v39 = vmul.f32 %v1049_v36, %v1748_v42 }
 0x300   : > { %v1053_v41 = vmul.f32 0.5, %v1052_v38  ;;  %v922_v25 = vpop.xlane.xlu2 %921 }
 0x301   : > { %v1157_v44 = vmul.f32 %v1815_v50, %v1137_v39  ;;  %v948_v45 = vmul.f32 %v922_v25, %v1695_v63 }
 0x302   : > { %v1054_v46 = vsub.f32 1.5, %v1053_v41 }
 0x303   : > { %v1452_v28 = vpop.eup %1451  ;;  %v1177_v51 = vadd.f32 %v1821_v52, %v1157_v44  ;;  %v964_v31 = vadd.f32 1e-05, %v948_v45 }
 0x304   : > { %v1055_v54 = vmul.f32 %v1450_v32, %v1054_v46  ;;  %v1061_v56 = vmul.f32 %v1452_v28, %v963_v22  ;;  %vm1067_vm0 = vweird.f32 %v1452_v28 }
 0x305   : > { %1193 = vst.msk [vmem:[%s1829_s19 + $0x38] sm:$0xff] %vm786_vm2, %v1177_v51  ;;  %1453 = vrsqrt.f32 %v964_v31  ;;  %vm1068_vm3 = vmor %vm1066_vm1, %vm1067_vm0  ;;  %vm1076_vm5 = vweird.f32 %v964_v31 }
 0x306   : > { %v1059_v42 = vsel %vm1058_vm15, %v1450_v32, %v1055_v54  ;;  %v1062_v18 = vmul.f32 %v1452_v28, %v1061_v56 }
 0x307   : > { %v1138_v58 = vmul.f32 %v1059_v42, %v1755_v48 }
 0x308   : > { %v1063_v34 = vmul.f32 0.5, %v1062_v18  ;;  %v925_v60 = vpop.xlane.xlu0 %924 }
 0x309   : > { %v1158_v61 = vmul.f32 %v1815_v50, %v1138_v58  ;;  %v949_v62 = vmul.f32 %v925_v60, %v1695_v63 }
 0x30a   : > { %v1064_v37 = vsub.f32 1.5, %v1063_v34 }
 0x30b   : > { %v1454_v1 = vpop.eup %1453  ;;  %v1178_v3 = vadd.f32 %v1821_v52, %v1158_v61  ;;  %v965_v2 = vadd.f32 1e-05, %v949_v62 }
 0x30c   : > { %v1065_v4 = vmul.f32 %v1452_v28, %v1064_v37  ;;  %v1071_v40 = vmul.f32 %v1454_v1, %v964_v31  ;;  %vm1077_vm4 = vweird.f32 %v1454_v1 }
 0x30d   : > { %1194 = vst.msk [vmem:[%s1829_s19 + $0x40] sm:$0xff] %vm786_vm2, %v1178_v3  ;;  %1455 = vrsqrt.f32 %v965_v2  ;;  %vm1078_vm6 = vmor %vm1076_vm5, %vm1077_vm4  ;;  %vm1086_vm8 = vweird.f32 %v965_v2 }
 0x30e   : > { %v1069_v48 = vsel %vm1068_vm3, %v1452_v28, %v1065_v4  ;;  %v1072_v5 = vmul.f32 %v1454_v1, %v1071_v40 }
 0x30f   : > { %v1139_v24 = vmul.f32 %v1069_v48, %v1762_v53 }
 0x310   : > { %v1073_v6 = vmul.f32 0.5, %v1072_v5  ;;  %v928_v43 = vpop.xlane.xlu1 %927  ;;  %v934_v11 = vpop.xlane.xlu0 %933 }
 0x311   : > { %v1159_v10 = vmul.f32 %v1815_v50, %v1139_v24  ;;  %v950_v14 = vmul.f32 %v928_v43, %v1695_v63  ;;  %v952_v15 = vmul.f32 %v934_v11, %v1695_v63 }
 0x312   : > { %v1074_v17 = vsub.f32 1.5, %v1073_v6 }
 0x313   : > { %v1456_v47 = vpop.eup %1455  ;;  %v1179_v13 = vadd.f32 %v1821_v52, %v1159_v10  ;;  %v966_v21 = vadd.f32 1e-05, %v950_v14  ;;  %v968_v7 = vadd.f32 1e-05, %v952_v15 }
 0x314   : > { %v1075_v23 = vmul.f32 %v1454_v1, %v1074_v17  ;;  %v1081_v53 = vmul.f32 %v1456_v47, %v965_v2  ;;  %vm1087_vm7 = vweird.f32 %v1456_v47 }
 0x315   : > { %1195 = vst.msk [vmem:[%s1829_s19 + $0x48] sm:$0xff] %vm786_vm2, %v1179_v13  ;;  %1457 = vrsqrt.f32 %v966_v21  ;;  %vm1088_vm9 = vmor %vm1086_vm8, %vm1087_vm7  ;;  %vm1096_vm12 = vweird.f32 %v966_v21  ;;  %vm1116_vm14 = vweird.f32 %v968_v7 }
 0x316   : > { %v1079_v30 = vsel %vm1078_vm6, %v1454_v1, %v1075_v23  ;;  %v1082_v16 = vmul.f32 %v1456_v47, %v1081_v53  ;;  %1459 = vrsqrt.f32 %v968_v7 }
 0x317   : > { %v1140_v26 = vmul.f32 %v1079_v30, %v1769_v59 }
 0x318   : > { %v1083_v27 = vmul.f32 0.5, %v1082_v16  ;;  %v931_v29 = vpop.xlane.xlu2 %930  ;;  %v937_v57 = vpop.xlane.xlu1 %936 }
 0x319   : > { %v1160_v19 = vmul.f32 %v1815_v50, %v1140_v26  ;;  %v951_v55 = vmul.f32 %v931_v29, %v1695_v63  ;;  %v953_v32 = vmul.f32 %v937_v57, %v1695_v63 }
 0x31a   : > { %v1084_v33 = vsub.f32 1.5, %v1083_v27 }
 0x31b   : > { %v1458_v22 = vpop.eup %1457  ;;  %v1180_v35 = vadd.f32 %v1821_v52, %v1160_v19  ;;  %v967_v12 = vadd.f32 1e-05, %v951_v55  ;;  %v969_v36 = vadd.f32 1e-05, %v953_v32 }
 0x31c   : > { %v1460_v38 = vpop.eup %1459  ;;  %v1085_v39 = vmul.f32 %v1456_v47, %v1084_v33  ;;  %v1091_v59 = vmul.f32 %v1458_v22, %v966_v21  ;;  %vm1097_vm10 = vweird.f32 %v1458_v22 }
 0x31d   : > { %1196 = vst.msk [vmem:[%s1829_s19 + $0x50] sm:$0xff] %vm786_vm2, %v1180_v35  ;;  %v1111_v41 = vmul.f32 %v1460_v38, %v968_v7  ;;  %1461 = vrsqrt.f32 %v967_v12  ;;  %vm1117_vm11 = vweird.f32 %v1460_v38  ;;  %vm1098_vm13 = vmor %vm1096_vm12, %vm1097_vm10  ;;  %vm1106_vm3 = vweird.f32 %v967_v12 }
 0x31e   : > { %v1089_v25 = vsel %vm1088_vm9, %v1456_v47, %v1085_v39  ;;  %v1092_v44 = vmul.f32 %v1458_v22, %v1091_v59  ;;  %1463 = vrsqrt.f32 %v969_v36  ;;  %vm1118_vm15 = vmor %vm1116_vm14, %vm1117_vm11  ;;  %vm1126_vm5 = vweird.f32 %v969_v36 }
 0x31f   : > { %v1141_v63 = vmul.f32 %v1089_v25, %v1776_v0  ;;  %v1112_v45 = vmul.f32 %v1460_v38, %v1111_v41 }
 0x320   : > { %v1093_v46 = vmul.f32 0.5, %v1092_v44 }
 0x321   : > { %v1161_v28 = vmul.f32 %v1815_v50, %v1141_v63  ;;  %v1113_v51 = vmul.f32 0.5, %v1112_v45 }
 0x322   : > { %v1094_v31 = vsub.f32 1.5, %v1093_v46 }
 0x323   : > { %v1462_v54 = vpop.eup %1461  ;;  %v1181_v56 = vadd.f32 %v1821_v52, %v1161_v28  ;;  %v1114_v42 = vsub.f32 1.5, %v1113_v51 }
 0x324   : > { %v1464_v18 = vpop.eup %1463  ;;  %v1095_v58 = vmul.f32 %v1458_v22, %v1094_v31  ;;  %v1101_v34 = vmul.f32 %v1462_v54, %v967_v12  ;;  %vm1107_vm0 = vweird.f32 %v1462_v54 }
 0x325   : > { %1197 = vst.msk [vmem:[%s1829_s19 + $0x58] sm:$0xff] %vm786_vm2, %v1181_v56  ;;  %v1115_v0 = vmul.f32 %v1460_v38, %v1114_v42  ;;  %v1121_v60 = vmul.f32 %v1464_v18, %v969_v36  ;;  %vm1127_vm1 = vweird.f32 %v1464_v18  ;;  %vm1108_vm4 = vmor %vm1106_vm3, %vm1107_vm0 }
 0x326   : > { %v1099_v61 = vsel %vm1098_vm13, %v1458_v22, %v1095_v58  ;;  %v1102_v62 = vmul.f32 %v1462_v54, %v1101_v34  ;;  %vm1128_vm6 = vmor %vm1126_vm5, %vm1127_vm1 }
 0x327   : > { %v1142_v37 = vmul.f32 %v1099_v61, %v1787_v9  ;;  %v1119_v1 = vsel %vm1118_vm15, %v1460_v38, %v1115_v0  ;;  %v1122_v3 = vmul.f32 %v1464_v18, %v1121_v60 }
 0x328   : > { %v1144_v2 = vmul.f32 %v1119_v1, %v1784_v8  ;;  %v1103_v4 = vmul.f32 0.5, %v1102_v62 }
 0x329   : > { %v1162_v40 = vmul.f32 %v1815_v50, %v1142_v37  ;;  %v1123_v48 = vmul.f32 0.5, %v1122_v3 }
 0x32a   : > { %v1164_v5 = vmul.f32 %v1815_v50, %v1144_v2  ;;  %v1104_v24 = vsub.f32 1.5, %v1103_v4 }
 0x32b   : > { %v1182_v6 = vadd.f32 %v1821_v52, %v1162_v40  ;;  %v1124_v43 = vsub.f32 1.5, %v1123_v48 }
 0x32c   : > { %v1184_v9 = vadd.f32 %v1821_v52, %v1164_v5  ;;  %v1105_v11 = vmul.f32 %v1462_v54, %v1104_v24 }
 0x32d   : > { %1198 = vst.msk [vmem:[%s1829_s19 + $0x60] sm:$0xff] %vm786_vm2, %v1182_v6  ;;  %v1125_v8 = vmul.f32 %v1464_v18, %v1124_v43 }
 0x32e   : > { %1200 = vst.msk [vmem:[%s1829_s19 + $0x70] sm:$0xff] %vm786_vm2, %v1184_v9  ;;  %v1109_v10 = vsel %vm1108_vm4, %v1462_v54, %v1105_v11 }
 0x32f   : > { %v1143_v14 = vmul.f32 %v1109_v10, %v1798_v49  ;;  %v1129_v15 = vsel %vm1128_vm6, %v1464_v18, %v1125_v8 }
 0x330   : > { %v1145_v17 = vmul.f32 %v1129_v15, %v1801_v20 }
 0x331   : > { %v1163_v47 = vmul.f32 %v1815_v50, %v1143_v14 }
 0x332   : > { %v1165_v13 = vmul.f32 %v1815_v50, %v1145_v17 }
 0x333   : > { %v1183_v21 = vadd.f32 %v1821_v52, %v1163_v47 }
 0x334   : > { %v1185_v7 = vadd.f32 %v1821_v52, %v1165_v13 }
 0x335   : > { %1199 = vst.msk [vmem:[%s1829_s19 + $0x68] sm:$0xff] %vm786_vm2, %v1183_v21 }
 0x336   : > { %1201 = vst.msk [vmem:[%s1829_s19 + $0x78] sm:$0xff] %vm786_vm2, %v1185_v7 }
 0x337 PF: > { %s19_s30 = sadd.s32 1, %s1471_s30  }
 0x338   : > { %p16_p4 = scmp.ge.s32.totalorder %s19_s30, 4  }
 0x33a   :  { %18 = sbr.rel (!%p16_p4) target bundleno = 1 (0x1), region = 86 }

</bundles_post_ra>
